<compile_context>
chip_gen: v7x
topology: tpu7x:2x2x1
jax: 0.10.0
libtpu: 0.0.40
codegen_flags: <defaults>
</compile_context>

<pallas_src>
import functools
import math

import jax
import jax.numpy as jnp
from jax.experimental import pallas as pl
from jax.experimental.pallas import tpu as pltpu

_LANE = 128
_DEFAULT_TILE_B = 4096  # obs block (16, 4096) f32 = 256 KiB; activations ~0.5 MiB each.


def _round_up(x, m):
    return ((x + m - 1) // m) * m


def _bf16_elementwise_default():
    """bf16 VPU/EUP exists on v6e / v7x; keep f32 elementwise on v5e and older."""
    try:
        kind = jax.devices()[0].device_kind.lower()
    except Exception:
        return False
    return any(tag in kind for tag in ("v6", "v7", "7x"))


def _mlp_critic_kernel(x_ref, w1_ref, b1_ref, w2_ref, b2_ref, w3_ref, b3_ref, out_ref,
                       *, bf16_elementwise):
    """One batch tile of the critic MLP, lane-dense end to end.

    x_ref  : (obs_dim, TILE_B) f32   streamed per grid step (feature-major)
    w1_ref : (H1, obs_dim)     bf16  resident   (PyTorch (out, in) orientation)
    b1_ref : (H1, 1)           f32   resident
    w2_ref : (H2, H1)          bf16  resident
    b2_ref : (H2, 1)           f32   resident
    w3_ref : (1, H2)           bf16  resident
    b3_ref : (1, 1)            f32   resident
    out_ref: (1, TILE_B)       f32   lane-dense output (batch along lanes)
    """
    bf16 = jnp.bfloat16

    def act(acc_f32, b_ref):
        # Bias add in f32 (accumulator dtype); tanh + cast in bf16 on v6e/v7x,
        # f32 tanh then cast on v5e (no bf16 VPU/EUP).  Either way the result is
        # bf16, ready for the next MXU dot.
        z = acc_f32 + b_ref[...]
        if bf16_elementwise:
            return jnp.tanh(z.astype(bf16))
        return jnp.tanh(z).astype(bf16)

    x_bf = x_ref[...].astype(bf16)                                      # (obs_dim, TILE_B)

    # Layer 1: (H1, obs_dim) @ (obs_dim, TILE_B) -> (H1, TILE_B), f32 accumulate.
    a1 = jnp.dot(w1_ref[...], x_bf, preferred_element_type=jnp.float32)
    h1 = act(a1, b1_ref)                                                # (H1, TILE_B) bf16

    # Layer 2: (H2, H1) @ (H1, TILE_B) -> (H2, TILE_B).
    a2 = jnp.dot(w2_ref[...], h1, preferred_element_type=jnp.float32)
    h2 = act(a2, b2_ref)                                                # (H2, TILE_B) bf16

    # Value head: (1, H2) @ (H2, TILE_B) -> (1, TILE_B), already lane-dense.
    v = jnp.dot(w3_ref[...], h2, preferred_element_type=jnp.float32) + b3_ref[...]
    out_ref[...] = v.astype(out_ref.dtype)


def mlp_d_critic_forward(obs, params, *, tile_b=_DEFAULT_TILE_B, bf16_elementwise=None):
    """obs: (B, obs_dim) f32 (row-major, PyTorch layout). params: dict from init_params.
    Returns (B,) value estimates, matching torch.squeeze(v_net(obs), -1)."""
    # TODO(synk): kernel is specialized to exactly two tanh hidden layers and d_output == 1
    # (the standard MLPDCritic configuration); arbitrary depth/activation would need a
    # generated kernel.
    w1, b1, w2, b2, w3, b3 = (
        params["w1"], params["b1"], params["w2"], params["b2"], params["w3"], params["b3"]
    )
    B, obs_dim = obs.shape
    if bf16_elementwise is None:
        bf16_elementwise = _bf16_elementwise_default()

    # Feature-major obs for lane-dense layer 1 and wide contiguous DMA rows.
    # TODO(synk): ideally the producer emits obs feature-major (and/or bf16) so this
    # transpose copy disappears entirely.
    obs_t = obs.T  # (obs_dim, B)

    # Batch tile: multiple of 128 (lane-aligned output), large enough to amortize the
    # per-grid-step overhead, but capped so large batches always give >= 2 tiles and
    # the "parallel" axis actually splits across v7x's two TensorCores.
    b_lanes = _round_up(B, _LANE)
    half = _round_up(pl.cdiv(b_lanes, 2), _LANE)
    tile_b = max(_LANE, min(tile_b, b_lanes, half))
    num_tiles = pl.cdiv(B, tile_b)  # partial last block handled by Pallas (no pad copy)

    def resident(arr):
        # Full-array block whose index never changes -> DMA'd once, stays in VMEM.
        nd = arr.ndim
        return pl.BlockSpec(arr.shape, lambda i, _nd=nd: (0,) * _nd)

    kernel = functools.partial(_mlp_critic_kernel, bf16_elementwise=bf16_elementwise)

    out = pl.pallas_call(
        kernel,
        out_shape=jax.ShapeDtypeStruct((1, B), jnp.float32),
        grid=(num_tiles,),
        in_specs=[
            pl.BlockSpec((obs_dim, tile_b), lambda i: (0, i)),  # streamed obs tile
            resident(w1), resident(b1),
            resident(w2), resident(b2),
            resident(w3), resident(b3),
        ],
        out_specs=pl.BlockSpec((1, tile_b), lambda i: (0, i)),  # lane-dense output
        compiler_params=pltpu.CompilerParams(
            dimension_semantics=("parallel",),  # shard batch tiles across v7x's 2 TCs
        ),
    )(obs_t, w1, b1, w2, b2, w3, b3)

    # torch.squeeze(v, -1): single value head, batch laid out along lanes.
    return out[0]


def init_params(key, obs_dim, hidden_sizes, d_output, *, weight_dtype=jnp.bfloat16):
    """PyTorch nn.Linear default init: U(-1/sqrt(fan_in), 1/sqrt(fan_in)).
    Weights stored in native PyTorch (out, in) orientation in bf16; biases stored as
    (out, 1) f32 so they broadcast along the lane (batch) axis in the kernel."""
    assert d_output == 1, "MLPDCritic value head has a single output"
    sizes = [obs_dim] + list(hidden_sizes) + [d_output]
    params = {}
    for j in range(len(sizes) - 1):
        fan_in, fan_out = sizes[j], sizes[j + 1]
        key, kw, kb = jax.random.split(key, 3)
        bound = 1.0 / math.sqrt(fan_in)
        w = jax.random.uniform(kw, (fan_out, fan_in), jnp.float32, -bound, bound)
        b = jax.random.uniform(kb, (fan_out, 1), jnp.float32, -bound, bound)
        params[f"w{j + 1}"] = w.astype(weight_dtype)
        params[f"b{j + 1}"] = b
    return params


def _reference(obs, params, bf16_elementwise):
    """Pure-JAX reference mirroring the kernel's bf16-operand / f32-accumulate math."""
    f32, bf16 = jnp.float32, jnp.bfloat16

    def act(a, b):
        z = a + b.T  # biases stored (H, 1); reference works row-major
        if bf16_elementwise:
            return jnp.tanh(z.astype(bf16)).astype(f32)
        return jnp.tanh(z)

    x = obs.astype(bf16)
    a1 = jnp.dot(x, params["w1"].T, preferred_element_type=f32)
    h1 = act(a1, params["b1"])
    a2 = jnp.dot(h1.astype(bf16), params["w2"].T, preferred_element_type=f32)
    h2 = act(a2, params["b2"])
    v = jnp.dot(h2.astype(bf16), params["w3"].T, preferred_element_type=f32) + params["b3"].T
    return jnp.squeeze(v, -1)


if __name__ == "__main__":
    key = jax.random.PRNGKey(0)
    obs_dim = 16
    hidden_sizes = (32, 32)
    d_output = 1
    batch = 8

    key, k_obs, k_par = jax.random.split(key, 3)
    obs = jax.random.normal(k_obs, (batch, obs_dim), dtype=jnp.float32)
    params = init_params(k_par, obs_dim, hidden_sizes, d_output)

    bf16_ew = _bf16_elementwise_default()
    v = mlp_d_critic_forward(obs, params, bf16_elementwise=bf16_ew)
    v = jax.block_until_ready(v)

    ref = _reference(obs, params, bf16_ew)

    tol = 3e-2 if bf16_ew else 2e-3
    assert v.shape == (batch,), v.shape
    err = float(jnp.max(jnp.abs(v - ref)))
    assert jnp.allclose(v, ref, atol=tol, rtol=tol), err

    print("KERNEL_OK")
</pallas_src>

<mosaic_0001>
module attributes {stable_mosaic.version = 11 : i64} {
  func.func @_mlp_critic_kernel(%arg0: i32, %arg1: memref<16x128xf32, #tpu.memory_space<vmem>>, %arg2: memref<32x16xbf16, #tpu.memory_space<vmem>>, %arg3: memref<32x1xf32, #tpu.memory_space<vmem>>, %arg4: memref<32x32xbf16, #tpu.memory_space<vmem>>, %arg5: memref<32x1xf32, #tpu.memory_space<vmem>>, %arg6: memref<1x32xbf16, #tpu.memory_space<vmem>>, %arg7: memref<1x1xf32, #tpu.memory_space<vmem>>, %arg8: memref<1x128xf32, #tpu.memory_space<vmem>>) attributes {dimension_semantics = [#tpu.dimension_semantics<parallel>], iteration_bounds = array<i64: 1>, scalar_prefetch = 0 : i64, scratch_operands = 0 : i64, tpu.core_type = #tpu.core_type<tc>, window_params = [{transform_indices = @transform_0, window_bounds = array<i64: 16, 128>}, {pipeline_mode = #tpu.pipeline_mode<synchronous>, transform_indices = @transform_1, window_bounds = array<i64: 32, 16>}, {pipeline_mode = #tpu.pipeline_mode<synchronous>, transform_indices = @transform_2, window_bounds = array<i64: 32, 1>}, {pipeline_mode = #tpu.pipeline_mode<synchronous>, transform_indices = @transform_3, window_bounds = array<i64: 32, 32>}, {pipeline_mode = #tpu.pipeline_mode<synchronous>, transform_indices = @transform_4, window_bounds = array<i64: 32, 1>}, {pipeline_mode = #tpu.pipeline_mode<synchronous>, transform_indices = @transform_5, window_bounds = array<i64: 1, 32>}, {pipeline_mode = #tpu.pipeline_mode<synchronous>, transform_indices = @transform_6, window_bounds = array<i64: 1, 1>}, {transform_indices = @transform_7, window_bounds = array<i64: 1, 128>}]} {
    %c0 = arith.constant 0 : index
    %c0_0 = arith.constant 0 : index
    %0 = vector.load %arg1[%c0, %c0_0] : memref<16x128xf32, #tpu.memory_space<vmem>>, vector<16x128xf32>
    %1 = arith.truncf %0 : vector<16x128xf32> to vector<16x128xbf16>
    %c0_1 = arith.constant 0 : index
    %c0_2 = arith.constant 0 : index
    %2 = vector.load %arg2[%c0_1, %c0_2] : memref<32x16xbf16, #tpu.memory_space<vmem>>, vector<32x16xbf16>
    %cst = arith.constant dense<0.000000e+00> : vector<32x128xf32>
    %3 = tpu.matmul %2, %1, %cst {dimension_numbers = #tpu.dot_dimension_numbers<[1], [0], [0], [1], [0, 0, 1, 1], [], []>} : vector<32x16xbf16>, vector<16x128xbf16>, vector<32x128xf32> -> vector<32x128xf32>
    %c0_3 = arith.constant 0 : index
    %c0_4 = arith.constant 0 : index
    %4 = vector.load %arg3[%c0_3, %c0_4] : memref<32x1xf32, #tpu.memory_space<vmem>>, vector<32x1xf32>
    %5 = vector.broadcast %4 : vector<32x1xf32> to vector<32x128xf32>
    %6 = arith.addf %3, %5 : vector<32x128xf32>
    %7 = math.tanh %6 : vector<32x128xf32>
    %8 = arith.truncf %7 : vector<32x128xf32> to vector<32x128xbf16>
    %c0_5 = arith.constant 0 : index
    %c0_6 = arith.constant 0 : index
    %9 = vector.load %arg4[%c0_5, %c0_6] : memref<32x32xbf16, #tpu.memory_space<vmem>>, vector<32x32xbf16>
    %cst_7 = arith.constant dense<0.000000e+00> : vector<32x128xf32>
    %10 = tpu.matmul %9, %8, %cst_7 {dimension_numbers = #tpu.dot_dimension_numbers<[1], [0], [0], [1], [0, 0, 1, 1], [], []>} : vector<32x32xbf16>, vector<32x128xbf16>, vector<32x128xf32> -> vector<32x128xf32>
    %c0_8 = arith.constant 0 : index
    %c0_9 = arith.constant 0 : index
    %11 = vector.load %arg5[%c0_8, %c0_9] : memref<32x1xf32, #tpu.memory_space<vmem>>, vector<32x1xf32>
    %12 = vector.broadcast %11 : vector<32x1xf32> to vector<32x128xf32>
    %13 = arith.addf %10, %12 : vector<32x128xf32>
    %14 = math.tanh %13 : vector<32x128xf32>
    %15 = arith.truncf %14 : vector<32x128xf32> to vector<32x128xbf16>
    %c0_10 = arith.constant 0 : index
    %c0_11 = arith.constant 0 : index
    %16 = vector.load %arg6[%c0_10, %c0_11] : memref<1x32xbf16, #tpu.memory_space<vmem>>, vector<1x32xbf16>
    %cst_12 = arith.constant dense<0.000000e+00> : vector<1x128xf32>
    %17 = tpu.matmul %16, %15, %cst_12 {dimension_numbers = #tpu.dot_dimension_numbers<[1], [0], [0], [1], [0, 0, 1, 1], [], []>} : vector<1x32xbf16>, vector<32x128xbf16>, vector<1x128xf32> -> vector<1x128xf32>
    %c0_13 = arith.constant 0 : index
    %c0_14 = arith.constant 0 : index
    %18 = vector.load %arg7[%c0_13, %c0_14] : memref<1x1xf32, #tpu.memory_space<vmem>>, vector<1x1xf32>
    %19 = vector.broadcast %18 : vector<1x1xf32> to vector<1x128xf32>
    %20 = arith.addf %17, %19 : vector<1x128xf32>
    %c0_15 = arith.constant 0 : index
    %c0_16 = arith.constant 0 : index
    %21 = vector.load %arg8[%c0_15, %c0_16] : memref<1x128xf32, #tpu.memory_space<vmem>>, vector<1x128xf32>
    tpu.vector_store %arg8[%c0_15, %c0_16], %20 {strides = array<i32>} : memref<1x128xf32, #tpu.memory_space<vmem>>, vector<1x128xf32>,
    return
  }
  func.func @transform_0(%arg0: i32) -> (i32, i32) {
    %c0_i32 = arith.constant 0 : i32
    %c0_i32_0 = arith.constant 0 : i32
    return %c0_i32, %arg0 : i32, i32
  }
  func.func @transform_1(%arg0: i32) -> (i32, i32) {
    %c0_i32 = arith.constant 0 : i32
    %c0_i32_0 = arith.constant 0 : i32
    %c0_i32_1 = arith.constant 0 : i32
    return %c0_i32, %c0_i32_0 : i32, i32
  }
  func.func @transform_2(%arg0: i32) -> (i32, i32) {
    %c0_i32 = arith.constant 0 : i32
    %c0_i32_0 = arith.constant 0 : i32
    %c0_i32_1 = arith.constant 0 : i32
    return %c0_i32, %c0_i32_0 : i32, i32
  }
  func.func @transform_3(%arg0: i32) -> (i32, i32) {
    %c0_i32 = arith.constant 0 : i32
    %c0_i32_0 = arith.constant 0 : i32
    %c0_i32_1 = arith.constant 0 : i32
    return %c0_i32, %c0_i32_0 : i32, i32
  }
  func.func @transform_4(%arg0: i32) -> (i32, i32) {
    %c0_i32 = arith.constant 0 : i32
    %c0_i32_0 = arith.constant 0 : i32
    %c0_i32_1 = arith.constant 0 : i32
    return %c0_i32, %c0_i32_0 : i32, i32
  }
  func.func @transform_5(%arg0: i32) -> (i32, i32) {
    %c0_i32 = arith.constant 0 : i32
    %c0_i32_0 = arith.constant 0 : i32
    %c0_i32_1 = arith.constant 0 : i32
    return %c0_i32, %c0_i32_0 : i32, i32
  }
  func.func @transform_6(%arg0: i32) -> (i32, i32) {
    %c0_i32 = arith.constant 0 : i32
    %c0_i32_0 = arith.constant 0 : i32
    %c0_i32_1 = arith.constant 0 : i32
    return %c0_i32, %c0_i32_0 : i32, i32
  }
  func.func @transform_7(%arg0: i32) -> (i32, i32) {
    %c0_i32 = arith.constant 0 : i32
    %c0_i32_0 = arith.constant 0 : i32
    return %c0_i32, %arg0 : i32, i32
  }
}

</mosaic_0001>

<bundles_post_ra>
// kernel: tpu_custom_call.1
= control target key start
LH: loop header
LB: loop body
LE: loop exit
PB: predicated region body
PF: predicated region fallthrough
CT: control target
= control target key end

     0   :  { %s502_s0 = inlined_call_operand.vmem [shape: f32[16,8], index: 0, kind: input, shape index: {}]   ;;  %s503_s1 = inlined_call_operand.vmem [shape: bf16[32,16], index: 1, kind: input, shape index: {}]   ;;  %s504_s2 = inlined_call_operand.vmem [shape: f32[32,1], index: 2, kind: input, shape index: {}]   ;;  %s505_s3 = inlined_call_operand.vmem [shape: bf16[32,32], index: 3, kind: input, shape index: {}]   ;;  %s506_s4 = inlined_call_operand.vmem [shape: f32[32,1], index: 4, kind: input, shape index: {}]   ;;  %s507_s5 = inlined_call_operand.vmem [shape: bf16[1,32], index: 5, kind: input, shape index: {}]   ;;  %s508_s6 = inlined_call_operand.<no memory space> [shape: f32[1,1], index: 6, kind: input, shape index: {}]   ;;  %s509_s7 = inlined_call_operand.hbm [shape: f32[1,8], index: 7, kind: output, shape index: {}]  }
   0x1   :  { %v12_v0 = vstv %s508_s6 }
   0x2   :  { %13 = vst [vmem:[#allocation2] sm:$0x1] %v12_v0 }
   0x3   :  { %v30_v1 = vld [vmem:[%s502_s0] sm:$0xff]  ;;  %v31_v2 = vld [vmem:[%s502_s0 + $0x8] sm:$0xff]  ;;  %vm71_vm0 = vcmask 130048   ;;  %v393_v5 = vmov 0   ;;  %v39_v8 = vld [vmem:[%s504_s2 + $0x10] sm:$0xff] }
   0x4   :  { %v32_v3 = vpack.c.bf16 %v31_v2, %v30_v1  ;;  %v349_v4 = vld [vmem:[%s503_s1] sm:$0xff]   ;;  %347 = vset.pattern.permute.xlu0 %v393_v5  ;;  %348 = vset.pattern.permute.xlu1 %v393_v5  ;;  %v350_v7 = vld [vmem:[%s503_s1 + $0x8] sm:$0xff]   ;;  %v40_v10 = vld [vmem:[%s504_s2 + $0x18] sm:$0xff] }
   0x5   :  { %v37_v6 = vld [vmem:[%s504_s2] sm:$0xff]  ;;  %323 = vmatprep.mubr.msk.bf16.mxu0 %vm71_vm0, %v349_v4  ;;  %v38_v9 = vld [vmem:[%s504_s2 + $0x8] sm:$0xff]  ;;  %53 = vperm.xlu1 %348, %v39_v8  }
   0x6   :  { %321 = vmatprep.subr.bf16.mxu0 %v32_v3  ;;  %43 = vperm.xlu0 %347, %v37_v6  }
   0x7   :  { %322 = vmatpush3.bf16.msra.mxu0 %v32_v3 }
   0xa   :  { %324 = vmatmul.mubr.msk.bf16.vlgmr.msra.gmra.mrb[0].mxu0 %vm71_vm0, %v350_v7 }
   0xb   :  { %14 = vsyncpa [#allocation4], 0  ;;  %48 = vperm.xlu0 %347, %v38_v9   ;;  %v137_v11 = vld [vmem:[%s506_s4] sm:$0xff]  ;;  %58 = vperm.xlu1 %348, %v40_v10   ;;  %v138_v12 = vld [vmem:[%s506_s4 + $0x8] sm:$0xff]  ;;  %vm171_vm1 = vcmask 261120   ;;  %v394_v36 = vmov 0.0   ;;  %v240_v56 = vlaneseq }
   0xc   :  { %v139_v13 = vld [vmem:[%s506_s4 + $0x10] sm:$0xff]  ;;  %v140_v14 = vld [vmem:[%s506_s4 + $0x18] sm:$0xff]  ;;  %v234_v15 = vld [vmem:[#allocation2] sm:$0x1]  ;;  %335 = vmatprep.subr.bf16.mxu0 %v394_v36  ;;  %vm395_vm2 = vmmov 0   ;;  %s396_s27 = smov [#allocation3]  }
   0xd   :  { %v351_v16 = vld [vmem:[%s505_s3] sm:$0xff]   ;;  %v352_v35 = vld [vmem:[%s505_s3 + $0x8] sm:$0xff]   ;;  %339 = vmatprep.mubr.msk.bf16.mxu0 %vm395_vm2, %v394_v36  ;;  %v241_v57 = vshrl.u32 %v240_v56, 7  ;;  %s294_s28 = sshll.u32 %s396_s27, 4  ;;  %s295_s28 = int_to_ptr.vmem [resolvable:$true] %s294_s28 }
   0xe   :  { %331 = vmatprep.mubr.msk.bf16.mxu1 %vm171_vm1, %v351_v16  ;;  %v233_v55 = vld [vmem:[%s507_s5] sm:$0x1]  ;;  %s369_s29 = scalar_lea.vmem %s295_s28, 16  ;;  %s373_s30 = scalar_lea.vmem %s295_s28, 32 }
   0xf   :  { %143 = vperm.xlu0 %347, %v137_v11   ;;  %148 = vperm.xlu1 %348, %v138_v12   ;;  %v242_v58 = vsub.s32 0, %v241_v57  ;;  %p370_p0 = scmp.ne.s32.totalorder %s295_s28, %s369_s29  ;;  %p374_p1 = scmp.lt.s32.totalorder %s295_s28, %s295_s28 }
  0x10   :  { %p375_p2 = scmp.lt.s32.totalorder %s373_s30, %s369_s29 }
  0x12   :  { %p376_p3 = por %p375_p2, %p374_p1 }
  0x13   :  { %153 = vperm.xlu0 %347, %v139_v13   ;;  %158 = vperm.xlu1 %348, %v140_v14  }
  0x14   :  { %p377_p4 = pnand %p376_p3, %p370_p0 }
  0x17   :  { %237 = vperm.xlu0 %347, %v234_v15  }
  0x84   :  { %v54_v17 = vpop.permute.xlu1 %53 }
  0x85   :  { %v44_v18 = vpop.permute.xlu0 %43 }
  0x8a   :  { %v59_v22 = vpop.permute.xlu1 %58  ;;  %v49_v25 = vpop.permute.xlu0 %48 }
  0x8e   :  { %v144_v37 = vpop.permute.xlu0 %143  ;;  %v149_v38 = vpop.permute.xlu1 %148 }
  0x92   :  { %v154_v39 = vpop.permute.xlu0 %153  ;;  %v159_v43 = vpop.permute.xlu1 %158 }
  0x96   :  { %v238_v59 = vpop.permute.xlu0 %237 }
  0x97   :  { %v243_v60 = vrot.slane %v238_v59, %v242_v58 }
  0xdd   :  { %v325_v19 = vpop.f32.mrb[0].mxu0 }
  0xde   :  { %v121_v20 = vadd.f32 %v325_v19, %v54_v17  ;;  %v112_v21 = vpop.f32.mrb[1].mxu0 }
  0xdf   :  { %v113_v23 = vadd.f32 %v112_v21, %v44_v18  ;;  %v326_v24 = vpop.f32.mrb[2].mxu0 }
  0xe0   :  { %353 = vtanh.f32 %v121_v20  ;;  %v124_v26 = vadd.f32 %v326_v24, %v59_v22  ;;  %v115_v27 = vpop.f32.mrb[3].mxu0 }
  0xe1   :  { %355 = vtanh.f32 %v113_v23  ;;  %v116_v28 = vadd.f32 %v115_v27, %v49_v25 }
  0xe2   :  { %357 = vtanh.f32 %v124_v26 }
  0xe3   :  { %359 = vtanh.f32 %v116_v28 }
  0xea   :  { %v354_v29 = vpop.eup %353 }
  0xeb   :  { %v356_v30 = vpop.eup %355 }
  0xec   :  { %v358_v31 = vpop.eup %357 }
  0xed   :  { %v360_v32 = vpop.eup %359  ;;  %v132_v33 = vpack.c.bf16 %v358_v31, %v354_v29 }
  0xee   :  { %v131_v34 = vpack.c.bf16 %v360_v32, %v356_v30 }
  0xf0   :  { %327 = vmatprep.subr.bf16.mxu1 %v131_v34 }
  0xf1   :  { %328 = vmatpush3.bf16.msra.mxu1 %v131_v34 }
  0xf2   :  { %329 = vmatprep.subr.bf16.mxu1 %v132_v33 }
  0xf5   :  { %330 = vmatpush3.bf16.msra.mxu1 %v132_v33 }
  0xf8   :  { %332 = vmatmul.mubr.msk.bf16.vlgmr.msra.gmra.mrb[0].mxu1 %vm171_vm1, %v352_v35 }
 0x1cb   :  { %v333_v40 = vpop.f32.mrb[0].mxu1 }
 0x1cc   :  { %v221_v41 = vadd.f32 %v333_v40, %v154_v39  ;;  %v212_v42 = vpop.f32.mrb[1].mxu1 }
 0x1cd   :  { %v213_v44 = vadd.f32 %v212_v42, %v144_v37  ;;  %v334_v45 = vpop.f32.mrb[2].mxu1 }
 0x1ce   :  { %361 = vtanh.f32 %v221_v41  ;;  %v224_v46 = vadd.f32 %v334_v45, %v159_v43  ;;  %v215_v47 = vpop.f32.mrb[3].mxu1 }
 0x1cf   :  { %363 = vtanh.f32 %v213_v44  ;;  %v216_v48 = vadd.f32 %v215_v47, %v149_v38 }
 0x1d0   :  { %365 = vtanh.f32 %v224_v46 }
 0x1d1   :  { %367 = vtanh.f32 %v216_v48 }
 0x1d8   :  { %v362_v49 = vpop.eup %361 }
 0x1d9   :  { %v364_v50 = vpop.eup %363 }
 0x1da   :  { %v366_v51 = vpop.eup %365 }
 0x1db   :  { %v368_v52 = vpop.eup %367  ;;  %v232_v53 = vpack.c.bf16 %v366_v51, %v362_v49 }
 0x1dc   :  { %v231_v54 = vpack.c.bf16 %v368_v52, %v364_v50 }
 0x1de   :  { %336 = vmatpush3.bf16.msra.mxu0 %v231_v54 }
 0x1df   :  { %337 = vmatprep.subr.bf16.mxu0 %v394_v36 }
 0x1e2   :  { %338 = vmatpush3.bf16.msra.mxu0 %v232_v53 }
 0x1e5   :  { %340 = vmatmul.mubr.msk.bf16.vlgmr.msra.gmra.mrb[4].mxu0 %vm171_vm1, %v233_v55 }
 0x2b8   :  { %v281_v61 = vpop.f32.mrb[4].mxu0 }
 0x2b9   :  { %v282_v62 = vadd.f32 %v281_v61, %v243_v60  ;;  %v341_v63 = vpop.f32.mrb[5].mxu0 }
 0x2ba   :  { %v284_v0 = vpop.f32.mrb[6].mxu0 }
 0x2bb   :  { %287 = vst [vmem:[#allocation3] sm:$0x1] %v282_v62  ;;  %v342_v1 = vpop.f32.mrb[7].mxu0 }
 0x2bc   :  { %380 = shalt.err (!%p377_p4)
}
 0x2bd   :  { %s381_s9 = scalar_lea.hbm %s509_s7, 16 }
 0x2be   :  { %p382_p5 = scmp.ne.s32.totalorder %s509_s7, %s381_s9  ;;  %p385_p6 = scmp.lt.u32.totalorder %s381_s9, %s509_s7 }
 0x2c0   :  { %p387_p7 = pnand %p385_p6, %p382_p5 }
 0x2c2   :  { %390 = shalt.err (!%p387_p7)
}
 0x2c3   :  { %297 = dma.vmem_to_hbm [thread:$0]  %s295_s28, 16, %s509_s7, [#allocation4]  }
 0x2c4   :  { %391 = dma.done.wait [#allocation4], 16  }
 0x2c5   :  { %392 = vsyncadd [#allocation4], 4294967280 }
 0x2c6   :  { %301 = vsyncpa [#allocation4], 1 }

</bundles_post_ra>
